<compile_context>
chip_gen: v7x
topology: tpu7x:2x2x1
jax: 0.10.0
libtpu: 0.0.40
codegen_flags: <defaults>
</compile_context>

<pallas_src>
import jax
import jax.numpy as jnp
from jax.experimental import pallas as pl
from jax.experimental.pallas import tpu as pltpu

KH = KW = 9  # Conv2d kernel_size=9, stride=1, padding=0


def _round_up(x, m):
    return (x + m - 1) // m * m


def _pick_tm(mp):
    """Largest M tile dividing mp, preferring >=2 grid steps (megacore + pipelining)."""
    for cand in (256, 128, 64, 32, 16, 8):
        if mp % cand == 0 and mp // cand >= 2:
            return cand
    for cand in (256, 128, 64, 32, 16, 8):
        if mp % cand == 0:
            return cand
    return mp


def _conv_mm_kernel(p_ref, w_ref, b_ref, o_ref, acc_ref):
    """One (tm, Np) output tile: accumulate over K blocks, then bias + ReLU."""
    k = pl.program_id(1)

    @pl.when(k == 0)
    def _():
        acc_ref[...] = jnp.zeros_like(acc_ref)

    acc_ref[...] += jnp.dot(p_ref[...], w_ref[...],
                            preferred_element_type=jnp.float32)

    @pl.when(k == pl.num_programs(1) - 1)
    def _():
        o_ref[...] = jnp.maximum(acc_ref[...] + b_ref[...], 0.0).astype(o_ref.dtype)


def _matmul_bias_relu(p2d, w2d, b2d, tm, tk):
    """(Mp, Kp) bf16 @ (Kp, Np) bf16 + bias (1, Np) f32 -> ReLU -> (Mp, Np) f32."""
    Mp, Kp = p2d.shape
    _, Np = w2d.shape
    grid = (Mp // tm, Kp // tk)

    # Explicit VMEM budget (matters on v7x's 64 MiB VMEM): double-buffered
    # A/B/out blocks + f32 accumulator + bias, with headroom.
    need = (2 * (tm * tk * 2 + tk * Np * 2 + tm * Np * 4)
            + tm * Np * 4 + 2 * Np * 4)
    vmem_limit = int(min(max(4 * need, 32 * 1024 * 1024), 48 * 1024 * 1024))

    cost = pl.CostEstimate(
        flops=2 * Mp * Kp * Np,
        transcendentals=0,
        bytes_accessed=Mp * Kp * 2 + grid[0] * Kp * Np * 2 + Mp * Np * 4,
    )

    return pl.pallas_call(
        _conv_mm_kernel,
        out_shape=jax.ShapeDtypeStruct((Mp, Np), jnp.float32),
        grid_spec=pltpu.PrefetchScalarGridSpec(
            num_scalar_prefetch=0,
            grid=grid,
            in_specs=[
                pl.BlockSpec((tm, tk), lambda i, k: (i, k)),   # patch tile
                pl.BlockSpec((tk, Np), lambda i, k: (k, 0)),   # weight: K-blocked, N-resident
                pl.BlockSpec((1, Np), lambda i, k: (0, 0)),    # bias: fully resident
            ],
            out_specs=pl.BlockSpec((tm, Np), lambda i, k: (i, 0)),
            scratch_shapes=[pltpu.VMEM((tm, Np), jnp.float32)],
        ),
        compiler_params=pltpu.CompilerParams(
            dimension_semantics=("parallel", "arbitrary"),
            vmem_limit_bytes=vmem_limit,
        ),
        cost_estimate=cost,
    )(p2d, w2d, b2d)


@jax.jit
def conv_layer_forward_nhwc(x, weight, bias):
    """relu(conv2d(x, weight, bias)); NCHW input, NHWC (B, OH, OW, Cout) output."""
    B, Cin, H, W = x.shape
    Cout = weight.shape[0]
    OH, OW = H - KH + 1, W - KW + 1
    M = B * OH * OW
    K = Cin * KH * KW

    # K tiling: one full block when small; 1024-wide K blocks when Cin is large
    # so per-step VMEM stays bounded and pipelining stays deep.
    if K > 2048:
        tk = 1024
    else:
        tk = _round_up(K, 128)
    Kp = _round_up(K, tk)

    # im2col, channels-last feature order (i*KW + j)*Cin + c, built by a single
    # lane-dense concat; the K padding is a fused zero chunk (no extra HBM pass).
    # bf16 operands feed the MXU at full rate; accumulation stays f32.
    x_nhwc = jnp.transpose(x, (0, 2, 3, 1)).astype(jnp.bfloat16)
    taps = [x_nhwc[:, i:i + OH, j:j + OW, :] for i in range(KH) for j in range(KW)]
    if Kp > K:
        taps.append(jnp.zeros((B, OH, OW, Kp - K), jnp.bfloat16))
    p2d = jnp.concatenate(taps, axis=-1).reshape(M, Kp)
    # TODO(synk): for large H/W, fuse patch extraction into the kernel (manual DMA of
    # overlapping row windows) to avoid materializing the 81x-replicated patches in HBM.

    Mp = _round_up(M, 8)
    if Mp > M:
        p2d = jnp.pad(p2d, ((0, Mp - M), (0, 0)))
    tm = _pick_tm(Mp)

    Np = _round_up(Cout, 128)
    # Reorder the (tiny) weight to match the tap-major / channel-minor patch features.
    w2d = jnp.transpose(weight, (2, 3, 1, 0)).reshape(K, Cout).astype(jnp.bfloat16)
    w2d = jnp.pad(w2d, ((0, Kp - K), (0, Np - Cout)))
    b2d = jnp.pad(bias.astype(jnp.float32).reshape(1, Cout), ((0, 0), (0, Np - Cout)))

    out = _matmul_bias_relu(p2d, w2d, b2d, tm, tk)
    return out[:M, :Cout].reshape(B, OH, OW, Cout)


@jax.jit
def conv_layer_forward(x, weight, bias):
    """ConvLayer.forward with PyTorch NCHW in/out layout (transpose only for API parity)."""
    return jnp.transpose(conv_layer_forward_nhwc(x, weight, bias), (0, 3, 1, 2))


def _reference(x, weight, bias):
    y = jax.lax.conv_general_dilated(
        x, weight, window_strides=(1, 1), padding="VALID",
        dimension_numbers=("NCHW", "OIHW", "NCHW"))
    return jnp.maximum(y + bias[None, :, None, None], 0.0)


if __name__ == "__main__":
    key = jax.random.PRNGKey(0)
    kx, kw, kb = jax.random.split(key, 3)

    # Small shapes consistent with the module: batch=2, in_channels=4,
    # spatial=16 -> output spatial 8, out_channels=256.
    B, Cin, H, W = 2, 4, 16, 16
    Cout = 256

    x = jax.random.normal(kx, (B, Cin, H, W), dtype=jnp.float32)
    fan_in = Cin * KH * KW
    bound = 1.0 / (fan_in ** 0.5)
    weight = jax.random.uniform(kw, (Cout, Cin, KH, KW), jnp.float32,
                                minval=-bound, maxval=bound)
    bias = jax.random.uniform(kb, (Cout,), jnp.float32,
                              minval=-bound, maxval=bound)

    out_nchw = jax.block_until_ready(conv_layer_forward(x, weight, bias))
    out_nhwc = jax.block_until_ready(conv_layer_forward_nhwc(x, weight, bias))

    ref = _reference(x, weight, bias)
    OH, OW = H - KH + 1, W - KW + 1
    assert out_nchw.shape == (B, Cout, OH, OW)
    assert out_nhwc.shape == (B, OH, OW, Cout)
    # bf16 MXU operands with f32 accumulation -> slightly looser tolerance than pure f32.
    assert jnp.allclose(out_nchw, ref, atol=2e-2, rtol=2e-2)
    assert jnp.allclose(out_nhwc, jnp.transpose(ref, (0, 2, 3, 1)), atol=2e-2, rtol=2e-2)

    print("KERNEL_OK")
</pallas_src>

<mosaic_0001>
module attributes {stable_mosaic.version = 11 : i64} {
  func.func @_conv_mm_kernel(%arg0: i32, %arg1: i32, %arg2: memref<64x384xbf16, #tpu.memory_space<vmem>>, %arg3: memref<384x256xbf16, #tpu.memory_space<vmem>>, %arg4: memref<1x256xf32, #tpu.memory_space<vmem>>, %arg5: memref<64x256xf32, #tpu.memory_space<vmem>>, %arg6: memref<64x256xf32, #tpu.memory_space<vmem>>) attributes {dimension_semantics = [#tpu.dimension_semantics<parallel>, #tpu.dimension_semantics<arbitrary>], iteration_bounds = array<i64: 2, 1>, scalar_prefetch = 0 : i64, scratch_operands = 1 : i64, tpu.core_type = #tpu.core_type<tc>, window_params = [{transform_indices = @transform_0, window_bounds = array<i64: 64, 384>}, {transform_indices = @transform_1, window_bounds = array<i64: 384, 256>}, {pipeline_mode = #tpu.pipeline_mode<synchronous>, transform_indices = @transform_2, window_bounds = array<i64: 1, 256>}, {transform_indices = @transform_3, window_bounds = array<i64: 64, 256>}]} {
    %c0_i32 = arith.constant 0 : i32
    %0 = arith.cmpi eq, %arg1, %c0_i32 : i32
    %1 = arith.extui %0 : i1 to i32
    %c0_i32_0 = arith.constant 0 : i32
    %2 = arith.cmpi ne, %1, %c0_i32_0 : i32
    scf.if %2 {
      %cst_10 = arith.constant 0.000000e+00 : f32
      %12 = vector.broadcast %cst_10 : f32 to vector<64x256xf32>
      %c0_11 = arith.constant 0 : index
      %c0_12 = arith.constant 0 : index
      %13 = vector.load %arg6[%c0_11, %c0_12] : memref<64x256xf32, #tpu.memory_space<vmem>>, vector<64x256xf32>
      tpu.vector_store %arg6[%c0_11, %c0_12], %12 {strides = array<i32>} : memref<64x256xf32, #tpu.memory_space<vmem>>, vector<64x256xf32>,
    } else {
    }
    %c0 = arith.constant 0 : index
    %c0_1 = arith.constant 0 : index
    %3 = vector.load %arg6[%c0, %c0_1] : memref<64x256xf32, #tpu.memory_space<vmem>>, vector<64x256xf32>
    %c0_2 = arith.constant 0 : index
    %c0_3 = arith.constant 0 : index
    %4 = vector.load %arg2[%c0_2, %c0_3] : memref<64x384xbf16, #tpu.memory_space<vmem>>, vector<64x384xbf16>
    %c0_4 = arith.constant 0 : index
    %c0_5 = arith.constant 0 : index
    %5 = vector.load %arg3[%c0_4, %c0_5] : memref<384x256xbf16, #tpu.memory_space<vmem>>, vector<384x256xbf16>
    %cst = arith.constant dense<0.000000e+00> : vector<64x256xf32>
    %6 = tpu.matmul %4, %5, %cst {dimension_numbers = #tpu.dot_dimension_numbers<[1], [0], [0], [1], [0, 0, 1, 1], [], []>} : vector<64x384xbf16>, vector<384x256xbf16>, vector<64x256xf32> -> vector<64x256xf32>
    %7 = arith.addf %3, %6 : vector<64x256xf32>
    %c0_6 = arith.constant 0 : index
    %c0_7 = arith.constant 0 : index
    %8 = vector.load %arg6[%c0_6, %c0_7] : memref<64x256xf32, #tpu.memory_space<vmem>>, vector<64x256xf32>
    tpu.vector_store %arg6[%c0_6, %c0_7], %7 {strides = array<i32>} : memref<64x256xf32, #tpu.memory_space<vmem>>, vector<64x256xf32>,
    %c0_i32_8 = arith.constant 0 : i32
    %9 = arith.cmpi eq, %arg1, %c0_i32_8 : i32
    %10 = arith.extui %9 : i1 to i32
    %c0_i32_9 = arith.constant 0 : i32
    %11 = arith.cmpi ne, %10, %c0_i32_9 : i32
    scf.if %11 {
      %c0_10 = arith.constant 0 : index
      %c0_11 = arith.constant 0 : index
      %12 = vector.load %arg6[%c0_10, %c0_11] : memref<64x256xf32, #tpu.memory_space<vmem>>, vector<64x256xf32>
      %c0_12 = arith.constant 0 : index
      %c0_13 = arith.constant 0 : index
      %13 = vector.load %arg4[%c0_12, %c0_13] : memref<1x256xf32, #tpu.memory_space<vmem>>, vector<1x256xf32>
      %14 = vector.broadcast %13 : vector<1x256xf32> to vector<64x256xf32>
      %15 = arith.addf %12, %14 : vector<64x256xf32>
      %cst_14 = arith.constant 0.000000e+00 : f32
      %16 = vector.broadcast %cst_14 : f32 to vector<64x256xf32>
      %17 = arith.maximumf %15, %16 : vector<64x256xf32>
      %c0_15 = arith.constant 0 : index
      %c0_16 = arith.constant 0 : index
      %18 = vector.load %arg5[%c0_15, %c0_16] : memref<64x256xf32, #tpu.memory_space<vmem>>, vector<64x256xf32>
      tpu.vector_store %arg5[%c0_15, %c0_16], %17 {strides = array<i32>} : memref<64x256xf32, #tpu.memory_space<vmem>>, vector<64x256xf32>,
    } else {
    }
    return
  }
  func.func @transform_0(%arg0: i32, %arg1: i32) -> (i32, i32) {
    %c0_i32 = arith.constant 0 : i32
    return %arg0, %arg1 : i32, i32
  }
  func.func @transform_1(%arg0: i32, %arg1: i32) -> (i32, i32) {
    %c0_i32 = arith.constant 0 : i32
    %c0_i32_0 = arith.constant 0 : i32
    return %arg1, %c0_i32 : i32, i32
  }
  func.func @transform_2(%arg0: i32, %arg1: i32) -> (i32, i32) {
    %c0_i32 = arith.constant 0 : i32
    %c0_i32_0 = arith.constant 0 : i32
    %c0_i32_1 = arith.constant 0 : i32
    return %c0_i32, %c0_i32_0 : i32, i32
  }
  func.func @transform_3(%arg0: i32, %arg1: i32) -> (i32, i32) {
    %c0_i32 = arith.constant 0 : i32
    %c0_i32_0 = arith.constant 0 : i32
    return %arg0, %c0_i32 : i32, i32
  }
}

</mosaic_0001>

<bundles_post_ra>
// kernel: conv_layer_forward_nhwc.1
= control target key start
LH: loop header
LB: loop body
LE: loop exit
PB: predicated region body
PF: predicated region fallthrough
CT: control target
= control target key end

     0   :  { %8 = vsyncpa [#allocation4], 0  ;;  %s1662_s0 = inlined_call_operand.vmem [shape: bf16[128,384], index: 0, kind: input, shape index: {}]   ;;  %s1663_s1 = inlined_call_operand.vmem [shape: bf16[384,256], index: 1, kind: input, shape index: {}]   ;;  %s1664_s2 = inlined_call_operand.vmem [shape: f32[1,256], index: 2, kind: input, shape index: {}]   ;;  %s1665_s3 = inlined_call_operand.hbm [shape: f32[128,256], index: 3, kind: output, shape index: {}]  }
   0x1   :  { %10 = vsyncpa [#allocation4 + $0x1], 0  ;;  %s1340_s12 = smov 0   ;;  %s1342_s13 = smov 0  }
   0x2   :  { %s1344_s14 = smov 0   ;;  %s1346_s15 = smov 0  }
   0x3   :  { %s1348_s16 = smov 0   ;;  %s1350_s17 = smov 0  }
   0x4 LB: > { %s996_s18 = sadd.s32 4294967295, %s1314_s17   ;;  %s997_s19 = sadd.s32 4294967294, %s1314_s17   ;;  %s1314_s17 = sphi %s1350_s17, %s16_s17   ;;  %s1310_s16 = sphi %s1348_s16, %s1672_s16   ;;  %s1306_s15 = sphi %s1346_s15, %s1671_s15   ;;  %s1302_s14 = sphi %s1344_s14, %s1670_s14   ;;  %s1298_s13 = sphi %s1342_s13, %s1669_s13   ;;  %s1294_s12 = sphi %s1340_s12, %s1668_s12  }
   0x5   : > { %s28_s20 = sadd.s32 1, %s1310_s16  ;;  %s110_s21 = sadd.s32 1, %s1302_s14 }
   0x6   : > { %p30_p0 = scmp.ge.s32.totalorder %s28_s20, 2  ;;  %p120_p1 = scmp.ne.s32.totalorder %s1302_s14, %s1298_s13 }
   0x7   : > { %p121_p2 = scmp.eq.s32.totalorder %s996_s18, 1  ;;  %p126_p3 = scmp.ne.s32.totalorder %s1298_s13, %s1294_s12 }
   0x8   : > { %s1674_s20 = smov (%p30_p0, %s28_s20), 0  ;;  %p127_p5 = scmp.eq.s32.totalorder %s997_s19, 1 }
   0x9   : > { %p1380_p4 = por %p121_p2, %p120_p1  ;;  %s107_s23 = ssub.s32 %s1310_s16, %s1674_s20 }
   0xa   : > { %p1001_p6 = scmp.ge.s32.totalorder %s1314_s17, 1  ;;  %p108_p7 = scmp.eq.s32.totalorder %s107_s23, 0 }
   0xb   : > { %p1387_p8 = por %p127_p5, %p126_p3  ;;  %p173_p9 = scmp.lt.s32.totalorder %s1314_s17, 3 }
   0xc   : > { %s1393_s25 = scalar_select %p108_p7, %s1302_s14, %s110_s21  }
   0xd   : > { %p174_p10 = pnand %p1001_p6, %p173_p9 }
   0xe   : > { %v1148_v0 = vld [vmem:[%s1663_s1 + $0x4] ss:$8 sps:$4 sm:$0xff] (!%p174_p10)   ;;  %v1150_v1 = vld [vmem:[%s1663_s1] ss:$8 sps:$4 sm:$0xff] (!%p174_p10)   ;;  %v1316_v2 = vmov (!%p174_p10), 0   ;;  %s1003_s21 = sshll.u32 (!%p174_p10), %s1306_s15, 3 }
   0xf   : > { %177 = sbr.rel (%p174_p10) target bundleno = 339 (0x153), region = 32  ;;  %738 = vmatprep.mubr.bf16.mxu0 (!%p174_p10), %v1316_v2  ;;  %633 = vmatprep.subr.bf16.mxu1 (!%p174_p10), %v1148_v0  ;;  %v1151_v3 = vld [vmem:[%s1663_s1 + $0x14] ss:$8 sps:$4 sm:$0xff] (!%p174_p10)   ;;  %v1153_v4 = vld [vmem:[%s1663_s1 + $0x10] ss:$8 sps:$4 sm:$0xff] (!%p174_p10)   ;;  %p210_p11 = scmp.lt.s32.totalorder (!%p174_p10), %s1003_s21, 15 }
  0x10   : > { %634 = vmatpush1.bf16.msra.mxu1 (!%p174_p10), %v1150_v1  ;;  %v1154_v5 = vld [vmem:[%s1663_s1 + $0x24] ss:$8 sps:$4 sm:$0xff] (!%p174_p10)   ;;  %v1156_v6 = vld [vmem:[%s1663_s1 + $0x20] ss:$8 sps:$4 sm:$0xff] (!%p174_p10)   ;;  %v1157_v7 = vld [vmem:[%s1663_s1 + $0x34] ss:$8 sps:$4 sm:$0xff] (!%p174_p10)   ;;  %v832_v1 = vlaneseq (!%p174_p10) }
  0x11   : > { %635 = vmatprep.subr.bf16.mxu1 (!%p174_p10), %v1151_v3  ;;  %v1159_v8 = vld [vmem:[%s1663_s1 + $0x30] ss:$8 sps:$4 sm:$0xff] (!%p174_p10)   ;;  %v1172_v9 = vld [vmem:[%s1663_s1 + $0x104] ss:$8 sps:$4 sm:$0xff] (!%p174_p10)   ;;  %v1174_v10 = vld [vmem:[%s1663_s1 + $0x100] ss:$8 sps:$4 sm:$0xff] (!%p174_p10)  }
  0x12   : > { %v1160_v11 = vld [vmem:[%s1663_s1 + $0x44] ss:$8 sps:$4 sm:$0xff] (!%p174_p10)   ;;  %706 = vmatprep.subr.bf16.mxu0 (!%p174_p10), %v1172_v9  ;;  %v1178_v12 = vld [vmem:[%s1663_s1 + $0x114] ss:$8 sps:$4 sm:$0xff] (!%p174_p10)   ;;  %v1180_v13 = vld [vmem:[%s1663_s1 + $0x110] ss:$8 sps:$4 sm:$0xff] (!%p174_p10)  }
  0x13   : > { %707 = vmatpush1.bf16.msra.mxu0 (!%p174_p10), %v1174_v10  ;;  %v1162_v14 = vld [vmem:[%s1663_s1 + $0x40] ss:$8 sps:$4 sm:$0xff] (!%p174_p10)   ;;  %v1163_v15 = vld [vmem:[%s1663_s1 + $0x54] ss:$8 sps:$4 sm:$0xff] (!%p174_p10)   ;;  %v1184_v16 = vld [vmem:[%s1663_s1 + $0x124] ss:$8 sps:$4 sm:$0xff] (!%p174_p10)  }
  0x14   : > { %636 = vmatpush1.bf16.msra.mxu1 (!%p174_p10), %v1153_v4  ;;  %708 = vmatprep.subr.bf16.mxu0 (!%p174_p10), %v1178_v12  ;;  %v1186_v17 = vld [vmem:[%s1663_s1 + $0x120] ss:$8 sps:$4 sm:$0xff] (!%p174_p10)   ;;  %v1165_v18 = vld [vmem:[%s1663_s1 + $0x50] ss:$8 sps:$4 sm:$0xff] (!%p174_p10)   ;;  %v1190_v19 = vld [vmem:[%s1663_s1 + $0x134] ss:$8 sps:$4 sm:$0xff] (!%p174_p10)  }
  0x15   : > { %637 = vmatprep.subr.bf16.mxu1 (!%p174_p10), %v1154_v5  ;;  %v1166_v20 = vld [vmem:[%s1663_s1 + $0x64] ss:$8 sps:$4 sm:$0xff] (!%p174_p10)   ;;  %v1192_v21 = vld [vmem:[%s1663_s1 + $0x130] ss:$8 sps:$4 sm:$0xff] (!%p174_p10)   ;;  %v1168_v22 = vld [vmem:[%s1663_s1 + $0x60] ss:$8 sps:$4 sm:$0xff] (!%p174_p10)  }
  0x16   : > { %v1196_v23 = vld [vmem:[%s1663_s1 + $0x144] ss:$8 sps:$4 sm:$0xff]   ;;  %s1676_s21 = smov (!%p210_p11, %s1003_s21), 15  ;;  %v1169_v24 = vld [vmem:[%s1663_s1 + $0x74] ss:$8 sps:$4 sm:$0xff]   ;;  %s1317_s11 = smov [#allocation3]  }
  0x17   : > { %709 = vmatpush1.bf16.msra.mxu0 %v1180_v13  ;;  %v1198_v25 = vld [vmem:[%s1663_s1 + $0x140] ss:$8 sps:$4 sm:$0xff]   ;;  %v1171_v26 = vld [vmem:[%s1663_s1 + $0x70] ss:$8 sps:$4 sm:$0xff]   ;;  %v1202_v27 = vld [vmem:[%s1663_s1 + $0x154] ss:$8 sps:$4 sm:$0xff]  }
  0x18   : > { %638 = vmatpush1.bf16.msra.mxu1 %v1156_v6  ;;  %710 = vmatprep.subr.bf16.mxu0 %v1184_v16  ;;  %s1089_s4 = smul.u32 12, %s1676_s21  ;;  %v1175_v28 = vld [vmem:[%s1663_s1 + $0x84] ss:$8 sps:$4 sm:$0xff]   ;;  %v1204_v29 = vld [vmem:[%s1663_s1 + $0x150] ss:$8 sps:$4 sm:$0xff]   ;;  %v833_v6 = vshrl.u32 %v832_v1, 7 }
  0x19   : > { %639 = vmatprep.subr.bf16.mxu1 %v1157_v7  ;;  %v1177_v30 = vld [vmem:[%s1663_s1 + $0x80] ss:$8 sps:$4 sm:$0xff]   ;;  %v1208_v31 = vld [vmem:[%s1663_s1 + $0x164] ss:$8 sps:$4 sm:$0xff]   ;;  %v1181_v32 = vld [vmem:[%s1663_s1 + $0x94] ss:$8 sps:$4 sm:$0xff]  }
  0x1a   : > { %s1493_s23 = scalar_lea.vmem %s1662_s0, %s1089_s4  ;;  %v1183_v33 = vld [vmem:[%s1663_s1 + $0x90] ss:$8 sps:$4 sm:$0xff]   ;;  %v1210_v34 = vld [vmem:[%s1663_s1 + $0x160] ss:$8 sps:$4 sm:$0xff]   ;;  %v1214_v36 = vld [vmem:[%s1663_s1 + $0x174] ss:$8 sps:$4 sm:$0xff]  }
  0x1b   : > { %711 = vmatpush1.bf16.msra.mxu0 %v1186_v17  ;;  %v1223_v35 = vld [vmem:[%s1493_s23 + $0x4] ss:$12 sps:$4 sm:$0xff]   ;;  %v1189_v39 = vld [vmem:[%s1663_s1 + $0xa0] ss:$8 sps:$4 sm:$0xff]   ;;  %v1193_v40 = vld [vmem:[%s1663_s1 + $0xb4] ss:$8 sps:$4 sm:$0xff]  }
  0x1c   : > { %640 = vmatpush1.bf16.msra.mxu1 %v1159_v8  ;;  %712 = vmatprep.subr.bf16.mxu0 %v1190_v19  ;;  %v1187_v37 = vld [vmem:[%s1663_s1 + $0xa4] ss:$8 sps:$4 sm:$0xff]   ;;  %v1216_v38 = vld [vmem:[%s1663_s1 + $0x170] ss:$8 sps:$4 sm:$0xff]   ;;  %v1220_v41 = vld [vmem:[%s1493_s23 + $0x8] ss:$12 sps:$4 sm:$0xff]  }
  0x1d   : > { %641 = vmatprep.subr.bf16.mxu1 %v1160_v11  ;;  %665 = vmatprep.mubr.bf16.mxu1 %v1223_v35  ;;  %v1195_v42 = vld [vmem:[%s1663_s1 + $0xb0] ss:$8 sps:$4 sm:$0xff]   ;;  %v1199_v43 = vld [vmem:[%s1663_s1 + $0xc4] ss:$8 sps:$4 sm:$0xff]   ;;  %v1201_v44 = vld [vmem:[%s1663_s1 + $0xc0] ss:$8 sps:$4 sm:$0xff]  }
  0x1e   : > { %v1205_v45 = vld [vmem:[%s1663_s1 + $0xd4] ss:$8 sps:$4 sm:$0xff]   ;;  %v1224_v46 = vld [vmem:[%s1493_s23 + $0x20] ss:$12 sps:$4 sm:$0xff]   ;;  %v1207_v47 = vld [vmem:[%s1663_s1 + $0xd0] ss:$8 sps:$4 sm:$0xff]  }
  0x1f   : > { %713 = vmatpush1.bf16.msra.mxu0 %v1192_v21  ;;  %v1211_v48 = vld [vmem:[%s1663_s1 + $0xe4] ss:$8 sps:$4 sm:$0xff]   ;;  %v1213_v49 = vld [vmem:[%s1663_s1 + $0xe0] ss:$8 sps:$4 sm:$0xff]   ;;  %v1217_v50 = vld [vmem:[%s1663_s1 + $0xf4] ss:$8 sps:$4 sm:$0xff]  }
  0x20   : > { %642 = vmatpush1.bf16.msra.mxu1 %v1162_v14  ;;  %714 = vmatprep.subr.bf16.mxu0 %v1196_v23  ;;  %v1228_v51 = vld [vmem:[%s1493_s23 + $0x38] ss:$12 sps:$4 sm:$0xff]   ;;  %v1221_v53 = vld [vmem:[%s1493_s23] ss:$12 sps:$4 sm:$0xff]   ;;  %v1225_v54 = vld [vmem:[%s1493_s23 + $0x1c] ss:$12 sps:$4 sm:$0xff]  }
  0x21   : > { %643 = vmatprep.subr.bf16.mxu1 %v1163_v15  ;;  %v1219_v52 = vld [vmem:[%s1663_s1 + $0xf0] ss:$8 sps:$4 sm:$0xff]   ;;  %v1229_v57 = vld [vmem:[%s1493_s23 + $0x34] ss:$12 sps:$4 sm:$0xff]   ;;  %v834_v7 = vsub.s32 0, %v833_v6  ;;  %v838_v10 = vsub.s32 1, %v833_v6 }
  0x22   : > { %v1232_v55 = vld [vmem:[%s1493_s23 + $0x50] ss:$12 sps:$4 sm:$0xff]   ;;  %v1227_v56 = vld [vmem:[%s1493_s23 + $0x18] ss:$12 sps:$4 sm:$0xff]   ;;  %v1235_v60 = vld [vmem:[%s1493_s23 + $0x48] ss:$12 sps:$4 sm:$0xff]  }
  0x23   : > { %715 = vmatpush1.bf16.msra.mxu0 %v1198_v25  ;;  %v1231_v58 = vld [vmem:[%s1493_s23 + $0x30] ss:$12 sps:$4 sm:$0xff]   ;;  %v1233_v59 = vld [vmem:[%s1493_s23 + $0x4c] ss:$12 sps:$4 sm:$0xff]   ;;  %v830_v9 = vld [vmem:[%s1664_s2] sm:$0x3] }
  0x24   : > { %644 = vmatpush1.bf16.msra.mxu1 %v1165_v18  ;;  %716 = vmatprep.subr.bf16.mxu0 %v1202_v27  ;;  %s205_s23 = sand.u32 1, %s1298_s13   ;;  %v1565_v14 = vrot.slane %v830_v9, %v834_v7  ;;  %v1567_v16 = vrot.slane %v830_v9, %v838_v10  ;;  %s1072_s4 = sshll.u32 %s1306_s15, 11 }
  0x25   : > { %645 = vmatprep.subr.bf16.mxu1 %v1166_v20  ;;  %s1002_s30 = sshll.u32 %s205_s23, 7  ;;  %s1607_s9 = scalar_lea.hbm %s1665_s3, %s1072_s4 }
  0x26   : > { %s1575_s5 = scalar_lea.vmem [#allocation3], %s1002_s30  ;;  %s1616_s15 = scalar_lea.sflag [#allocation4], %s205_s23 }
  0x27   : > { %717 = vmatpush1.bf16.msra.mxu0 %v1204_v29  ;;  %s905_s6 = sshll.u32 %s1575_s5, 4  ;;  %s1240_s18 = sshll.u32 %s1317_s11, 4  ;;  %s1609_s6 = int_to_ptr.vmem [resolvable:$true] %s905_s6  ;;  %s1241_s18 = int_to_ptr.vmem [resolvable:$false] %s1240_s18 }
  0x28   : > { %646 = vmatpush1.bf16.msra.mxu1 %v1168_v22  ;;  %718 = vmatprep.subr.bf16.mxu0 %v1208_v31  ;;  %s1236_s10 = scalar_lea.vmem %s1609_s6, 2048  ;;  %s1242_s21 = scalar_lea.vmem %s1241_s18, 4096 }
  0x29   : > { %647 = vmatprep.subr.bf16.mxu1 %v1169_v24  ;;  %p1237_p12 = scmp.ne.s32.totalorder %s1609_s6, %s1236_s10  ;;  %p1243_p1 = scmp.lt.s32.totalorder %s1609_s6, %s1241_s18 }
  0x2a   : > { %p1244_p2 = scmp.lt.s32.totalorder %s1242_s21, %s1236_s10 }
  0x2b   : > { %719 = vmatpush1.bf16.msra.mxu0 %v1210_v34  ;;  %p1238_p13 = pnand %p1237_p12, %p1380_p4 }
  0x2c   : > { %648 = vmatpush1.bf16.msra.mxu1 %v1171_v26  ;;  %720 = vmatprep.subr.bf16.mxu0 %v1214_v36  ;;  %p1245_p3 = por %p1244_p2, %p1243_p1 }
  0x2d   : > { %649 = vmatprep.subr.bf16.mxu1 %v1175_v28  ;;  %p1239_p0 = pneg %p1238_p13 }
  0x2f   : > { %721 = vmatpush1.bf16.msra.mxu0 %v1216_v38  ;;  %p1246_p5 = pnand %p1245_p3, %p1239_p0 }
  0x30   : > { %650 = vmatpush1.bf16.msra.mxu1 %v1177_v30 }
  0x31   : > { %651 = vmatprep.subr.bf16.mxu1 %v1181_v32 }
  0x32   : > { %739 = vmatmul.mubr.bf16.vlgmr.msra.gmra.mrb[0].mxu0 %v1220_v41 }
  0x33   : > { %748 = vmatprep.mubr.bf16.mxu0 %v1316_v2 }
  0x34   : > { %652 = vmatpush1.bf16.msra.mxu1 %v1183_v33 }
  0x35   : > { %653 = vmatprep.subr.bf16.mxu1 %v1187_v37 }
  0x38   : > { %654 = vmatpush1.bf16.msra.mxu1 %v1189_v39 }
  0x39   : > { %655 = vmatprep.subr.bf16.mxu1 %v1193_v40 }
  0x3a   : > { %749 = vmatmul.mubr.bf16.gmra.mrb[4].mxu0 %v1224_v46 }
  0x3b   : > { %758 = vmatprep.mubr.bf16.mxu0 %v1316_v2 }
  0x3c   : > { %656 = vmatpush1.bf16.msra.mxu1 %v1195_v42 }
  0x3d   : > { %657 = vmatprep.subr.bf16.mxu1 %v1199_v43 }
  0x40   : > { %658 = vmatpush1.bf16.msra.mxu1 %v1201_v44 }
  0x41   : > { %659 = vmatprep.subr.bf16.mxu1 %v1205_v45 }
  0x42   : > { %759 = vmatmul.mubr.bf16.gmra.mrb[8].mxu0 %v1228_v51 }
  0x43   : > { %768 = vmatprep.mubr.bf16.mxu0 %v1316_v2 }
  0x44   : > { %660 = vmatpush1.bf16.msra.mxu1 %v1207_v47 }
  0x45   : > { %661 = vmatprep.subr.bf16.mxu1 %v1211_v48 }
  0x48   : > { %662 = vmatpush1.bf16.msra.mxu1 %v1213_v49 }
  0x49   : > { %663 = vmatprep.subr.bf16.mxu1 %v1217_v50 }
  0x4a   : > { %769 = vmatmul.mubr.bf16.gmra.mrb[12].mxu0 %v1232_v55 }
  0x4c   : > { %664 = vmatpush1.bf16.msra.mxu1 %v1219_v52 }
  0x4f   : > { %666 = vmatmul.mubr.bf16.vlgmr.msra.gmra.mrb[0].mxu1 %v1221_v53 }
  0x50   : > { %675 = vmatprep.mubr.bf16.mxu1 %v1225_v54 }
  0x57   : > { %676 = vmatmul.mubr.bf16.gmra.mrb[4].mxu1 %v1227_v56 }
  0x58   : > { %685 = vmatprep.mubr.bf16.mxu1 %v1229_v57 }
  0x5f   : > { %686 = vmatmul.mubr.bf16.gmra.mrb[8].mxu1 %v1231_v58 }
  0x60   : > { %695 = vmatprep.mubr.bf16.mxu1 %v1233_v59 }
  0x67   : > { %696 = vmatmul.mubr.bf16.gmra.mrb[12].mxu1 %v1235_v60 }
 0x105   : > { %v740_v61 = vpop.f32.mrb[0].mxu0 }
 0x106   : > { %v742_v62 = vpop.f32.mrb[1].mxu0 }
 0x107   : > { %v744_v63 = vpop.f32.mrb[2].mxu0 }
 0x108   : > { %v746_v0 = vpop.f32.mrb[3].mxu0 }
 0x10d   : > { %v750_v2 = vpop.f32.mrb[4].mxu0 }
 0x10e   : > { %v752_v3 = vpop.f32.mrb[5].mxu0 }
 0x10f   : > { %v754_v4 = vpop.f32.mrb[6].mxu0 }
 0x110   : > { %v756_v5 = vpop.f32.mrb[7].mxu0 }
 0x115   : > { %v760_v8 = vpop.f32.mrb[8].mxu0 }
 0x116   : > { %v762_v11 = vpop.f32.mrb[9].mxu0 }
 0x117   : > { %v764_v12 = vpop.f32.mrb[10].mxu0 }
 0x118   : > { %v766_v13 = vpop.f32.mrb[11].mxu0 }
 0x11d   : > { %v770_v24 = vpop.f32.mrb[12].mxu0 }
 0x11e   : > { %v772_v27 = vpop.f32.mrb[13].mxu0 }
 0x11f   : > { %v774_v30 = vpop.f32.mrb[14].mxu0 }
 0x120   : > { %v776_v33 = vpop.f32.mrb[15].mxu0 }
 0x122   : > { %v667_v15 = vpop.f32.mrb[0].mxu1 }
 0x123   : > { %v741_v17 = vadd.f32 %v740_v61, %v667_v15  ;;  %v669_v18 = vpop.f32.mrb[1].mxu1 }
 0x124   : > { %v743_v19 = vadd.f32 %v742_v62, %v669_v18  ;;  %v671_v20 = vpop.f32.mrb[2].mxu1 }
 0x125   : > { %v842_v21 = vadd.f32 %v1565_v14, %v741_v17  ;;  %v745_v22 = vadd.f32 %v744_v63, %v671_v20  ;;  %v673_v23 = vpop.f32.mrb[3].mxu1 }
 0x126   : > { %v843_v25 = vadd.f32 %v1567_v16, %v743_v19  ;;  %v747_v26 = vadd.f32 %v746_v0, %v673_v23 }
 0x127   : > { %v858_v28 = vmax.f32 %v842_v21, 0.0  ;;  %v844_v29 = vadd.f32 %v1565_v14, %v745_v22 }
 0x128   : > { %v859_v31 = vmax.f32 %v843_v25, 0.0  ;;  %v845_v32 = vadd.f32 %v1567_v16, %v747_v26 }
 0x129   : > { %874 = vst [vmem:[%s1575_s5] sm:$0xff] %v858_v28  ;;  %v860_v34 = vmax.f32 %v844_v29, 0.0 }
 0x12a   : > { %875 = vst [vmem:[%s1575_s5 + $0x8] sm:$0xff] %v859_v31  ;;  %v861_v35 = vmax.f32 %v845_v32, 0.0  ;;  %v677_v36 = vpop.f32.mrb[4].mxu1 }
 0x12b   : > { %876 = vst [vmem:[%s1575_s5 + $0x10] sm:$0xff] %v860_v34  ;;  %v751_v37 = vadd.f32 %v750_v2, %v677_v36  ;;  %v679_v38 = vpop.f32.mrb[5].mxu1 }
 0x12c   : > { %877 = vst [vmem:[%s1575_s5 + $0x18] sm:$0xff] %v861_v35  ;;  %v753_v39 = vadd.f32 %v752_v3, %v679_v38  ;;  %v681_v40 = vpop.f32.mrb[6].mxu1 }
 0x12d   : > { %v846_v41 = vadd.f32 %v1565_v14, %v751_v37  ;;  %v755_v42 = vadd.f32 %v754_v4, %v681_v40  ;;  %v683_v43 = vpop.f32.mrb[7].mxu1 }
 0x12e   : > { %v847_v44 = vadd.f32 %v1567_v16, %v753_v39  ;;  %v757_v45 = vadd.f32 %v756_v5, %v683_v43 }
 0x12f   : > { %v862_v46 = vmax.f32 %v846_v41, 0.0  ;;  %v848_v47 = vadd.f32 %v1565_v14, %v755_v42 }
 0x130   : > { %v863_v48 = vmax.f32 %v847_v44, 0.0  ;;  %v849_v49 = vadd.f32 %v1567_v16, %v757_v45 }
 0x131   : > { %878 = vst [vmem:[%s1575_s5 + $0x20] sm:$0xff] %v862_v46  ;;  %v864_v50 = vmax.f32 %v848_v47, 0.0 }
 0x132   : > { %879 = vst [vmem:[%s1575_s5 + $0x28] sm:$0xff] %v863_v48  ;;  %v865_v51 = vmax.f32 %v849_v49, 0.0  ;;  %v687_v52 = vpop.f32.mrb[8].mxu1 }
 0x133   : > { %880 = vst [vmem:[%s1575_s5 + $0x30] sm:$0xff] %v864_v50  ;;  %v761_v53 = vadd.f32 %v760_v8, %v687_v52  ;;  %v689_v54 = vpop.f32.mrb[9].mxu1 }
 0x134   : > { %881 = vst [vmem:[%s1575_s5 + $0x38] sm:$0xff] %v865_v51  ;;  %v763_v55 = vadd.f32 %v762_v11, %v689_v54  ;;  %v691_v56 = vpop.f32.mrb[10].mxu1 }
 0x135   : > { %v850_v57 = vadd.f32 %v1565_v14, %v761_v53  ;;  %v765_v58 = vadd.f32 %v764_v12, %v691_v56  ;;  %v693_v59 = vpop.f32.mrb[11].mxu1 }
 0x136   : > { %v851_v60 = vadd.f32 %v1567_v16, %v763_v55  ;;  %v767_v61 = vadd.f32 %v766_v13, %v693_v59 }
 0x137   : > { %v866_v62 = vmax.f32 %v850_v57, 0.0  ;;  %v852_v63 = vadd.f32 %v1565_v14, %v765_v58 }
 0x138   : > { %v867_v0 = vmax.f32 %v851_v60, 0.0  ;;  %v853_v1 = vadd.f32 %v1567_v16, %v767_v61 }
 0x139   : > { %882 = vst [vmem:[%s1575_s5 + $0x40] sm:$0xff] %v866_v62  ;;  %v868_v2 = vmax.f32 %v852_v63, 0.0 }
 0x13a   : > { %883 = vst [vmem:[%s1575_s5 + $0x48] sm:$0xff] %v867_v0  ;;  %v869_v3 = vmax.f32 %v853_v1, 0.0  ;;  %v697_v4 = vpop.f32.mrb[12].mxu1 }
 0x13b   : > { %884 = vst [vmem:[%s1575_s5 + $0x50] sm:$0xff] %v868_v2  ;;  %v771_v5 = vadd.f32 %v770_v24, %v697_v4  ;;  %v699_v6 = vpop.f32.mrb[13].mxu1 }
 0x13c   : > { %885 = vst [vmem:[%s1575_s5 + $0x58] sm:$0xff] %v869_v3  ;;  %v773_v7 = vadd.f32 %v772_v27, %v699_v6  ;;  %v701_v8 = vpop.f32.mrb[14].mxu1 }
 0x13d   : > { %v854_v9 = vadd.f32 %v1565_v14, %v771_v5  ;;  %v775_v10 = vadd.f32 %v774_v30, %v701_v8  ;;  %v703_v11 = vpop.f32.mrb[15].mxu1 }
 0x13e   : > { %v855_v12 = vadd.f32 %v1567_v16, %v773_v7  ;;  %v777_v13 = vadd.f32 %v776_v33, %v703_v11 }
 0x13f   : > { %v870_v15 = vmax.f32 %v854_v9, 0.0  ;;  %v856_v17 = vadd.f32 %v1565_v14, %v775_v10 }
 0x140   : > { %v871_v18 = vmax.f32 %v855_v12, 0.0  ;;  %v857_v19 = vadd.f32 %v1567_v16, %v777_v13 }
 0x141   : > { %886 = vst [vmem:[%s1575_s5 + $0x60] sm:$0xff] %v870_v15  ;;  %v872_v20 = vmax.f32 %v856_v17, 0.0 }
 0x142   : > { %887 = vst [vmem:[%s1575_s5 + $0x68] sm:$0xff] %v871_v18  ;;  %v873_v21 = vmax.f32 %v857_v19, 0.0 }
 0x143   : > { %888 = vst [vmem:[%s1575_s5 + $0x70] sm:$0xff] %v872_v20 }
 0x144   : > { %889 = vst [vmem:[%s1575_s5 + $0x78] sm:$0xff] %v873_v21 }
 0x145   : > { %1249 = shalt.err (!%p1246_p5)
}
 0x146   : > { %s1250_s19 = scalar_lea.hbm %s1607_s9, 2048  ;;  %s1254_s28 = scalar_lea.hbm %s1665_s3, 4096 }
 0x147   : > { %p1251_p6 = scmp.ne.s32.totalorder %s1607_s9, %s1250_s19  ;;  %p1255_p10 = scmp.lt.u32.totalorder %s1607_s9, %s1665_s3 }
 0x148   : > { %p1256_p11 = scmp.lt.u32.totalorder %s1254_s28, %s1250_s19  ;;  %p1258_p13 = scmp.lt.u32.totalorder %s1250_s19, %s1607_s9 }
 0x149   : > { %p1252_p7 = pnand %p1251_p6, %p1380_p4 }
 0x14a   : > { %p1257_p12 = por %p1256_p11, %p1255_p10 }
 0x14b   : > { %p1253_p9 = pneg %p1252_p7 }
 0x14c   : > { %p1259_p0 = por %p1258_p13, %p1257_p12 }
 0x14e   : > { %p1260_p1 = pnand %p1259_p0, %p1253_p9 }
 0x150   : > { %1263 = shalt.err (!%p1260_p1)
}
 0x151   : > { %s1318_s30 = smov 256   ;;  %s1319_s5 = smov 16  }
 0x152   : > { %1090 = dma.vmem_to_hbm [thread:$0]  (%p1380_p4), %s1609_s6, 2048, %s1607_s9, %s1616_s15, %s1318_s30, %s1318_s30, %s1319_s5  }
 0x153 PF: > { %p1096_p2 = scmp.ge.s32.totalorder %s1314_s17, 2  ;;  %s920_s4 = sand.u32 1, %s1294_s12  }
 0x154   : > { %s921_s7 = scalar_lea.sflag [#allocation4], %s920_s4 }
 0x155   : > { %p1093_p3 = pnand %p1096_p2, %p1387_p8 }
 0x157   : > { %1289 = dma.done.wait (!%p1093_p3), %s921_s7, 2048  }
 0x158   : > { %1291 = vsyncadd (!%p1093_p3), %s921_s7, 4294965248  ;;  %s16_s17 = sadd.s32 1, %s1314_s17   ;;  %s1668_s12 = smov %s1298_s13 }
 0x159   : > { %p13_p5 = scmp.ge.s32.totalorder %s16_s17, 4   ;;  %s1669_s13 = smov %s1302_s14 }
 0x15a   : > { %s1670_s14 = smov %s1393_s25  ;;  %s1671_s15 = smov %s1310_s16 }
 0x15b   : > { %s1672_s16 = smov %s1674_s20  ;;  %15 = sbr.rel (!%p13_p5) target bundleno = 4 (0x4), region = 78 }
 0x162   :  { %926 = vsyncpa [#allocation4], 1 }
 0x163   :  { %928 = vsyncpa [#allocation4 + $0x1], 1 }

</bundles_post_ra>
